<compile_context>
chip_gen: v7x
topology: tpu7x:2x2x1
jax: 0.10.0
libtpu: 0.0.40
codegen_flags: <defaults>
</compile_context>

<pallas_src>
import jax
import jax.numpy as jnp
from jax.experimental import pallas as pl
from jax.experimental.pallas import tpu as pltpu

SUBLANE = 8


def _round_up(x, m):
    return ((x + m - 1) // m) * m


def policy_net_kernel(x_ref, w1_ref, b1_ref, w2_ref, b2_ref, w3_ref, b3_ref,
                      out_ref):
    """Fused forward for one batch tile: relu(fc1)->relu(fc2)->fc3->softmax."""
    # In-kernel bf16 cast of x (avoids a separate XLA cast + HBM round trip).
    x = x_ref[...].astype(jnp.bfloat16)                    # [TILE_B, IN]

    # fc1 + ReLU  (bf16 MXU matmul, f32 accumulate; bias/ReLU in f32)
    h1 = jnp.dot(x, w1_ref[...], preferred_element_type=jnp.float32)
    h1 = jnp.maximum(h1 + b1_ref[...], 0.0)

    # fc2 + ReLU
    h2 = jnp.dot(h1.astype(jnp.bfloat16), w2_ref[...],
                 preferred_element_type=jnp.float32)
    h2 = jnp.maximum(h2 + b2_ref[...], 0.0)

    # fc3
    logits = jnp.dot(h2.astype(jnp.bfloat16), w3_ref[...],
                     preferred_element_type=jnp.float32)
    logits = logits + b3_ref[...]

    # Numerically-stable softmax over the last axis.  Exact divide so rows sum
    # to 1.0 (cost is invisible in this mem-bound kernel).
    m = jnp.max(logits, axis=-1, keepdims=True)
    e = jnp.exp(logits - m)
    denom = jnp.sum(e, axis=-1, keepdims=True)
    out_ref[...] = (e / denom).astype(out_ref.dtype)


def prepare_params(params):
    """One-time conversion of PyTorch-layout params for the kernel.

    Call once (after init / after each optimizer step), NOT per forward --
    this removes the per-call pad/cast HBM traffic flagged in review.
    Weights: [in_features, out_features] bf16.  Biases: [1, out_features] f32.
    """
    bf = jnp.bfloat16
    return {
        "w1": jnp.asarray(params["w1"], bf),
        "b1": jnp.asarray(params["b1"], jnp.float32),
        "w2": jnp.asarray(params["w2"], bf),
        "b2": jnp.asarray(params["b2"], jnp.float32),
        "w3": jnp.asarray(params["w3"], bf),
        "b3": jnp.asarray(params["b3"], jnp.float32),
    }


def _choose_batch_tiling(batch, tile_b_max):
    """Pick (n_tiles, tile_b): avoid a mostly-padding last tile, and give both
    v7x TensorCores work (>=2 grid steps) when the batch is large enough."""
    n_tiles = max(1, pl.cdiv(batch, tile_b_max))
    if n_tiles == 1 and batch >= 2 * SUBLANE:
        n_tiles = 2                       # megacore: >= 2 grid steps on v7x
    tile_b = _round_up(pl.cdiv(batch, n_tiles), SUBLANE)
    return n_tiles, tile_b


def policy_net_forward(x, prepared_params, *, tile_b=2048):
    """x: [B, input_dim] float32.  prepared_params: output of prepare_params().

    Returns softmax probabilities [B, output_dim] in float32.
    """
    p = prepared_params
    w1, b1, w2, b2 = p["w1"], p["b1"], p["w2"], p["b2"]
    w3, b3 = p["w3"], p["b3"]

    B, in_dim = x.shape
    hid = w1.shape[1]
    out_dim = w3.shape[1]

    n_tiles, tile_b = _choose_batch_tiling(B, tile_b)
    b_pad = n_tiles * tile_b
    if b_pad != B:
        # Only the batch axis is (lightly) zero-padded; feature axes stay
        # unpadded so the dominant x/out HBM streams carry no lane padding.
        x = jnp.pad(x, ((0, b_pad - B), (0, 0)))

    probs = pl.pallas_call(
        policy_net_kernel,
        out_shape=jax.ShapeDtypeStruct((b_pad, out_dim), jnp.float32),
        grid_spec=pltpu.PrefetchScalarGridSpec(
            num_scalar_prefetch=0,
            grid=(n_tiles,),
            in_specs=[
                # x tile: marches over the batch axis (double-buffer pipelined).
                # Last dim equals the full array dim -> legal unpadded block.
                pl.BlockSpec((tile_b, in_dim), lambda i: (i, 0)),
                # Weights / biases: constant block index -> VMEM-resident.
                pl.BlockSpec((in_dim, hid), lambda i: (0, 0)),
                pl.BlockSpec((1, hid), lambda i: (0, 0)),
                pl.BlockSpec((hid, hid), lambda i: (0, 0)),
                pl.BlockSpec((1, hid), lambda i: (0, 0)),
                pl.BlockSpec((hid, out_dim), lambda i: (0, 0)),
                pl.BlockSpec((1, out_dim), lambda i: (0, 0)),
            ],
            # Narrow (un-padded) output: ~16x less writeback than a padded
            # 128-lane slab; masked stores are cheaper than the extra bytes.
            out_specs=pl.BlockSpec((tile_b, out_dim), lambda i: (i, 0)),
        ),
        compiler_params=pltpu.CompilerParams(
            dimension_semantics=("parallel",)),
    )(x, w1, b1, w2, b2, w3, b3)

    return probs[:B]


def init_params(key, input_dim, output_dim, hidden_dim):
    """Deterministic synthetic init (mimics nn.Linear uniform bounds)."""
    keys = jax.random.split(key, 6)

    def linear(kw, kb, fan_in, fan_out):
        bound = 1.0 / jnp.sqrt(jnp.float32(fan_in))
        w = jax.random.uniform(kw, (fan_in, fan_out), jnp.float32, -bound, bound)
        b = jax.random.uniform(kb, (1, fan_out), jnp.float32, -bound, bound)
        return w, b

    w1, b1 = linear(keys[0], keys[1], input_dim, hidden_dim)
    w2, b2 = linear(keys[2], keys[3], hidden_dim, hidden_dim)
    w3, b3 = linear(keys[4], keys[5], hidden_dim, output_dim)
    return {"w1": w1, "b1": b1, "w2": w2, "b2": b2, "w3": w3, "b3": b3}


if __name__ == "__main__":
    key = jax.random.PRNGKey(0)
    k_x, k_p = jax.random.split(key)

    batch = 8
    input_dim = 16
    hidden_dim = 32
    output_dim = 8

    x = jax.random.normal(k_x, (batch, input_dim), dtype=jnp.float32)
    params = init_params(k_p, input_dim, output_dim, hidden_dim)

    # One-time param prep (bf16 cast); the forward itself does no padding/cast
    # HBM traffic.
    prepared = prepare_params(params)

    fwd = jax.jit(policy_net_forward, static_argnames=("tile_b",))
    probs = jax.block_until_ready(fwd(x, prepared))

    # Sanity: shape and exact (to f32 rounding) row-sum 1.
    assert probs.shape == (batch, output_dim)
    assert jnp.allclose(jnp.sum(probs, axis=-1), 1.0, atol=1e-5)

    # Pure-JAX reference with the same bf16 matmul / f32 accumulate recipe.
    # (bf16 weights diverge from a true f32 PyTorch PolicyNet by ~1e-3
    # relative -- acceptable for a policy head.)
    def ref(x, p):
        bfd = jnp.bfloat16
        h = jnp.maximum(
            jnp.dot(x.astype(bfd), p["w1"].astype(bfd),
                    preferred_element_type=jnp.float32) + p["b1"], 0.0)
        h = jnp.maximum(
            jnp.dot(h.astype(bfd), p["w2"].astype(bfd),
                    preferred_element_type=jnp.float32) + p["b2"], 0.0)
        lg = jnp.dot(h.astype(bfd), p["w3"].astype(bfd),
                     preferred_element_type=jnp.float32) + p["b3"]
        return jax.nn.softmax(lg, axis=-1)

    assert jnp.allclose(probs, ref(x, params), atol=2e-3)

    print("KERNEL_OK")
</pallas_src>

<mosaic_0001>
module attributes {stable_mosaic.version = 11 : i64} {
  func.func @policy_net_kernel(%arg0: i32, %arg1: memref<8x16xf32, #tpu.memory_space<vmem>>, %arg2: memref<16x32xbf16, #tpu.memory_space<vmem>>, %arg3: memref<1x32xf32, #tpu.memory_space<vmem>>, %arg4: memref<32x32xbf16, #tpu.memory_space<vmem>>, %arg5: memref<1x32xf32, #tpu.memory_space<vmem>>, %arg6: memref<32x8xbf16, #tpu.memory_space<vmem>>, %arg7: memref<1x8xf32, #tpu.memory_space<vmem>>, %arg8: memref<8x8xf32, #tpu.memory_space<vmem>>) attributes {dimension_semantics = [#tpu.dimension_semantics<parallel>], iteration_bounds = array<i64: 1>, scalar_prefetch = 0 : i64, scratch_operands = 0 : i64, tpu.core_type = #tpu.core_type<tc>, window_params = [{transform_indices = @transform_0, window_bounds = array<i64: 8, 16>}, {pipeline_mode = #tpu.pipeline_mode<synchronous>, transform_indices = @transform_1, window_bounds = array<i64: 16, 32>}, {pipeline_mode = #tpu.pipeline_mode<synchronous>, transform_indices = @transform_2, window_bounds = array<i64: 1, 32>}, {pipeline_mode = #tpu.pipeline_mode<synchronous>, transform_indices = @transform_3, window_bounds = array<i64: 32, 32>}, {pipeline_mode = #tpu.pipeline_mode<synchronous>, transform_indices = @transform_4, window_bounds = array<i64: 1, 32>}, {pipeline_mode = #tpu.pipeline_mode<synchronous>, transform_indices = @transform_5, window_bounds = array<i64: 32, 8>}, {pipeline_mode = #tpu.pipeline_mode<synchronous>, transform_indices = @transform_6, window_bounds = array<i64: 1, 8>}, {transform_indices = @transform_7, window_bounds = array<i64: 8, 8>}]} {
    %c0 = arith.constant 0 : index
    %c0_0 = arith.constant 0 : index
    %0 = vector.load %arg1[%c0, %c0_0] : memref<8x16xf32, #tpu.memory_space<vmem>>, vector<8x16xf32>
    %1 = arith.truncf %0 : vector<8x16xf32> to vector<8x16xbf16>
    %c0_1 = arith.constant 0 : index
    %c0_2 = arith.constant 0 : index
    %2 = vector.load %arg2[%c0_1, %c0_2] : memref<16x32xbf16, #tpu.memory_space<vmem>>, vector<16x32xbf16>
    %cst = arith.constant dense<0.000000e+00> : vector<8x32xf32>
    %3 = tpu.matmul %1, %2, %cst {dimension_numbers = #tpu.dot_dimension_numbers<[1], [0], [0], [1], [0, 0, 1, 1], [], []>} : vector<8x16xbf16>, vector<16x32xbf16>, vector<8x32xf32> -> vector<8x32xf32>
    %c0_3 = arith.constant 0 : index
    %c0_4 = arith.constant 0 : index
    %4 = vector.load %arg3[%c0_3, %c0_4] : memref<1x32xf32, #tpu.memory_space<vmem>>, vector<1x32xf32>
    %5 = vector.broadcast %4 : vector<1x32xf32> to vector<8x32xf32>
    %6 = arith.addf %3, %5 : vector<8x32xf32>
    %cst_5 = arith.constant 0.000000e+00 : f32
    %7 = vector.broadcast %cst_5 : f32 to vector<8x32xf32>
    %8 = arith.maximumf %6, %7 : vector<8x32xf32>
    %9 = arith.truncf %8 : vector<8x32xf32> to vector<8x32xbf16>
    %c0_6 = arith.constant 0 : index
    %c0_7 = arith.constant 0 : index
    %10 = vector.load %arg4[%c0_6, %c0_7] : memref<32x32xbf16, #tpu.memory_space<vmem>>, vector<32x32xbf16>
    %cst_8 = arith.constant dense<0.000000e+00> : vector<8x32xf32>
    %11 = tpu.matmul %9, %10, %cst_8 {dimension_numbers = #tpu.dot_dimension_numbers<[1], [0], [0], [1], [0, 0, 1, 1], [], []>} : vector<8x32xbf16>, vector<32x32xbf16>, vector<8x32xf32> -> vector<8x32xf32>
    %c0_9 = arith.constant 0 : index
    %c0_10 = arith.constant 0 : index
    %12 = vector.load %arg5[%c0_9, %c0_10] : memref<1x32xf32, #tpu.memory_space<vmem>>, vector<1x32xf32>
    %13 = vector.broadcast %12 : vector<1x32xf32> to vector<8x32xf32>
    %14 = arith.addf %11, %13 : vector<8x32xf32>
    %cst_11 = arith.constant 0.000000e+00 : f32
    %15 = vector.broadcast %cst_11 : f32 to vector<8x32xf32>
    %16 = arith.maximumf %14, %15 : vector<8x32xf32>
    %17 = arith.truncf %16 : vector<8x32xf32> to vector<8x32xbf16>
    %c0_12 = arith.constant 0 : index
    %c0_13 = arith.constant 0 : index
    %18 = vector.load %arg6[%c0_12, %c0_13] : memref<32x8xbf16, #tpu.memory_space<vmem>>, vector<32x8xbf16>
    %cst_14 = arith.constant dense<0.000000e+00> : vector<8x8xf32>
    %19 = tpu.matmul %17, %18, %cst_14 {dimension_numbers = #tpu.dot_dimension_numbers<[1], [0], [0], [1], [0, 0, 1, 1], [], []>} : vector<8x32xbf16>, vector<32x8xbf16>, vector<8x8xf32> -> vector<8x8xf32>
    %c0_15 = arith.constant 0 : index
    %c0_16 = arith.constant 0 : index
    %20 = vector.load %arg7[%c0_15, %c0_16] : memref<1x8xf32, #tpu.memory_space<vmem>>, vector<1x8xf32>
    %21 = vector.broadcast %20 : vector<1x8xf32> to vector<8x8xf32>
    %22 = arith.addf %19, %21 : vector<8x8xf32>
    %cst_17 = arith.constant dense<0xFF800000> : vector<8xf32>
    %23 = vector.multi_reduction <maximumf>, %22, %cst_17 [1] : vector<8x8xf32> to vector<8xf32>
    %24 = vector.shape_cast %23 : vector<8xf32> to vector<8x1xf32>
    %25 = vector.broadcast %24 : vector<8x1xf32> to vector<8x8xf32>
    %26 = arith.subf %22, %25 : vector<8x8xf32>
    %27 = math.exp %26 : vector<8x8xf32>
    %cst_18 = arith.constant dense<0.000000e+00> : vector<8xf32>
    %28 = vector.multi_reduction <add>, %27, %cst_18 [1] : vector<8x8xf32> to vector<8xf32>
    %29 = vector.shape_cast %28 : vector<8xf32> to vector<8x1xf32>
    %30 = vector.broadcast %29 : vector<8x1xf32> to vector<8x8xf32>
    %31 = arith.divf %27, %30 : vector<8x8xf32>
    %c0_19 = arith.constant 0 : index
    %c0_20 = arith.constant 0 : index
    %32 = vector.load %arg8[%c0_19, %c0_20] : memref<8x8xf32, #tpu.memory_space<vmem>>, vector<8x8xf32>
    tpu.vector_store %arg8[%c0_19, %c0_20], %31 {strides = array<i32>} : memref<8x8xf32, #tpu.memory_space<vmem>>, vector<8x8xf32>,
    return
  }
  func.func @transform_0(%arg0: i32) -> (i32, i32) {
    %c0_i32 = arith.constant 0 : i32
    %c0_i32_0 = arith.constant 0 : i32
    return %arg0, %c0_i32 : i32, i32
  }
  func.func @transform_1(%arg0: i32) -> (i32, i32) {
    %c0_i32 = arith.constant 0 : i32
    %c0_i32_0 = arith.constant 0 : i32
    %c0_i32_1 = arith.constant 0 : i32
    return %c0_i32, %c0_i32_0 : i32, i32
  }
  func.func @transform_2(%arg0: i32) -> (i32, i32) {
    %c0_i32 = arith.constant 0 : i32
    %c0_i32_0 = arith.constant 0 : i32
    %c0_i32_1 = arith.constant 0 : i32
    return %c0_i32, %c0_i32_0 : i32, i32
  }
  func.func @transform_3(%arg0: i32) -> (i32, i32) {
    %c0_i32 = arith.constant 0 : i32
    %c0_i32_0 = arith.constant 0 : i32
    %c0_i32_1 = arith.constant 0 : i32
    return %c0_i32, %c0_i32_0 : i32, i32
  }
  func.func @transform_4(%arg0: i32) -> (i32, i32) {
    %c0_i32 = arith.constant 0 : i32
    %c0_i32_0 = arith.constant 0 : i32
    %c0_i32_1 = arith.constant 0 : i32
    return %c0_i32, %c0_i32_0 : i32, i32
  }
  func.func @transform_5(%arg0: i32) -> (i32, i32) {
    %c0_i32 = arith.constant 0 : i32
    %c0_i32_0 = arith.constant 0 : i32
    %c0_i32_1 = arith.constant 0 : i32
    return %c0_i32, %c0_i32_0 : i32, i32
  }
  func.func @transform_6(%arg0: i32) -> (i32, i32) {
    %c0_i32 = arith.constant 0 : i32
    %c0_i32_0 = arith.constant 0 : i32
    %c0_i32_1 = arith.constant 0 : i32
    return %c0_i32, %c0_i32_0 : i32, i32
  }
  func.func @transform_7(%arg0: i32) -> (i32, i32) {
    %c0_i32 = arith.constant 0 : i32
    %c0_i32_0 = arith.constant 0 : i32
    return %arg0, %c0_i32 : i32, i32
  }
}

</mosaic_0001>

<bundles_post_ra>
// kernel: policy_net_forward.1
= control target key start
LH: loop header
LB: loop body
LE: loop exit
PB: predicated region body
PF: predicated region fallthrough
CT: control target
= control target key end

     0   :  { %12 = vsyncpa [#allocation3], 0  ;;  %s463_s0 = inlined_call_operand.vmem [shape: f32[8,16], index: 0, kind: input, shape index: {}]   ;;  %s464_s1 = inlined_call_operand.vmem [shape: bf16[16,32], index: 1, kind: input, shape index: {}]   ;;  %s465_s2 = inlined_call_operand.vmem [shape: f32[1,32], index: 2, kind: input, shape index: {}]   ;;  %s466_s3 = inlined_call_operand.vmem [shape: bf16[32,32], index: 3, kind: input, shape index: {}]   ;;  %s467_s4 = inlined_call_operand.vmem [shape: f32[1,32], index: 4, kind: input, shape index: {}]   ;;  %s468_s5 = inlined_call_operand.vmem [shape: bf16[32,8], index: 5, kind: input, shape index: {}]   ;;  %s469_s6 = inlined_call_operand.hbm [shape: f32[1,8], index: 6, kind: input, shape index: {}]   ;;  %s470_s7 = inlined_call_operand.hbm [shape: f32[8,8], index: 7, kind: output, shape index: {}]  }
   0x1   :  { %13 = vsyncpa [#allocation4], 0  ;;  %s368_s24 = smov [#allocation2]   ;;  %s320_s28 = scalar_lea.hbm %s469_s6, 16 }
   0x2   :  { %s32_s25 = sshll.u32 %s368_s24, 4  ;;  %p321_p0 = scmp.ne.s32.totalorder %s469_s6, %s320_s28  ;;  %s33_s25 = int_to_ptr.vmem [resolvable:$true] %s32_s25 }
   0x3   :  { %p324_p1 = scmp.lt.u32.totalorder %s320_s28, %s469_s6 }
   0x5   :  { %p326_p2 = pnand %p324_p1, %p321_p0 }
   0x7   :  { %329 = shalt.err (!%p326_p2)
}
   0x8   :  { %s330_s10 = scalar_lea.vmem %s33_s25, 16  ;;  %s334_s11 = scalar_lea.vmem %s33_s25, 32 }
   0x9   :  { %p331_p3 = scmp.ne.s32.totalorder %s33_s25, %s330_s10  ;;  %p335_p4 = scmp.lt.s32.totalorder %s33_s25, %s33_s25 }
   0xa   :  { %p336_p5 = scmp.lt.s32.totalorder %s334_s11, %s330_s10 }
   0xc   :  { %p337_p6 = por %p336_p5, %p335_p4 }
   0xe   :  { %p338_p7 = pnand %p337_p6, %p331_p3 }
  0x10   :  { %341 = shalt.err (!%p338_p7)
}
  0x11   :  { %35 = dma.hbm_to_vmem [thread:$0]  %s469_s6, 16, %s33_s25, [#allocation3]  }
  0x12   :  { %364 = dma.done.wait [#allocation3], 16  }
  0x13   :  { %365 = vsyncadd [#allocation3], 4294967280  ;;  %v369_v0 = vmov 0.0   ;;  %vm370_vm0 = vmmov 0   ;;  %v311_v1 = vld [vmem:[%s464_s1] sm:$0xff]   ;;  %vm57_vm1 = vcmask 130048  }
  0x14   :  { %285 = vmatprep.subr.bf16.mxu0 %v369_v0  ;;  %287 = vmatprep.mubr.msk.bf16.mxu0 %vm370_vm0, %v369_v0  ;;  %v40_v2 = vld [vmem:[%s463_s0] sm:$0xff]  ;;  %v313_v5 = vld [vmem:[%s466_s3 + $0x8] sm:$0xff]   ;;  %vm126_vm2 = vcmask 261120   ;;  %vm238_vm3 = vcmask 64512  }
  0x15   :  { %291 = vmatprep.subr.bf16.mxu1 %v369_v0  ;;  %295 = vmatprep.mubr.msk.bf16.mxu1 %vm370_vm0, %v369_v0  ;;  %v41_v3 = vpack.c.bf16 %v40_v2, %v40_v2  ;;  %v312_v4 = vld [vmem:[%s466_s3] sm:$0xff]   ;;  %v315_v15 = vld [vmem:[%s468_s5 + $0x8] sm:$0xff]  }
  0x16   :  { %286 = vmatpush3.bf16.msra.mxu0 %v311_v1  ;;  %292 = vmatpush3.bf16.msra.mxu1 %v312_v4  ;;  %v314_v6 = vld [vmem:[%s468_s5] sm:$0xff]  }
  0x17   :  { %299 = vmatprep.subr.bf16.mxu0 %v369_v0  ;;  %293 = vmatprep.subr.bf16.mxu1 %v369_v0  ;;  %v266_v7 = vld [vmem:[%s465_s2] ss:$0 sm:$0xff]  ;;  %s371_s2 = smov [#allocation5]  }
  0x18   :  { %v269_v16 = vld [vmem:[%s467_s4] ss:$0 sm:$0xff]  ;;  %s257_s4 = sshll.u32 %s371_s2, 4  ;;  %s258_s4 = int_to_ptr.vmem [resolvable:$true] %s257_s4 }
  0x19   :  { %288 = vmatmul.mubr.msk.bf16.vlgmr.msra.gmra.mrb[0].mxu0 %vm57_vm1, %v41_v3  ;;  %v273_v24 = vld [vmem:[#allocation2] ss:$0 sm:$0xff]  ;;  %s342_s5 = scalar_lea.vmem %s258_s4, 128  ;;  %p347_p9 = scmp.lt.s32.totalorder %s258_s4, %s258_s4 }
  0x1a   :  { %303 = vmatprep.mubr.msk.bf16.mxu0 %vm370_vm0, %v369_v0  ;;  %294 = vmatpush3.bf16.msra.mxu1 %v313_v5  ;;  %p343_p8 = scmp.ne.s32.totalorder %s258_s4, %s342_s5  ;;  %p348_p10 = scmp.lt.s32.totalorder %s342_s5, %s342_s5 }
  0x1b   :  { %300 = vmatpush3.bf16.msra.mxu0 %v314_v6 }
  0x1c   :  { %301 = vmatprep.subr.bf16.mxu0 %v369_v0  ;;  %p349_p11 = por %p348_p10, %p347_p9 }
  0x1e   :  { %p350_p12 = pnand %p349_p11, %p343_p8 }
  0x1f   :  { %302 = vmatpush3.bf16.msra.mxu0 %v315_v15 }
  0xec   :  { %v95_v8 = vpop.f32.mrb[0].mxu0 }
  0xed   :  { %v96_v9 = vadd.f32 %v266_v7, %v95_v8  ;;  %v289_v10 = vpop.f32.mrb[1].mxu0 }
  0xee   :  { %v98_v11 = vpop.f32.mrb[2].mxu0 }
  0xef   :  { %v101_v12 = vmax.f32 %v96_v9, 0.0  ;;  %v290_v13 = vpop.f32.mrb[3].mxu0 }
  0xf1   :  { %v102_v14 = vpack.c.bf16 %v101_v12, %v101_v12 }
  0xf3   :  { %296 = vmatmul.mubr.msk.bf16.vlgmr.msra.gmra.mrb[0].mxu1 %vm126_vm2, %v102_v14 }
 0x1c6   :  { %v164_v17 = vpop.f32.mrb[0].mxu1 }
 0x1c7   :  { %v165_v18 = vadd.f32 %v269_v16, %v164_v17  ;;  %v297_v19 = vpop.f32.mrb[1].mxu1 }
 0x1c8   :  { %v167_v20 = vpop.f32.mrb[2].mxu1 }
 0x1c9   :  { %v170_v21 = vmax.f32 %v165_v18, 0.0  ;;  %v298_v22 = vpop.f32.mrb[3].mxu1 }
 0x1cb   :  { %v171_v23 = vpack.c.bf16 %v170_v21, %v170_v21 }
 0x1cd   :  { %304 = vmatmul.mubr.msk.bf16.vlgmr.msra.gmra.mrb[4].mxu0 %vm126_vm2, %v171_v23 }
 0x2a0   :  { %v232_v25 = vpop.f32.mrb[4].mxu0 }
 0x2a1   :  { %v233_v26 = vadd.f32 %v273_v24, %v232_v25  ;;  %v305_v27 = vpop.f32.mrb[5].mxu0 }
 0x2a2   :  { %v235_v28 = vpop.f32.mrb[6].mxu0 }
 0x2a3   :  { %v306_v29 = vpop.f32.mrb[7].mxu0  ;;  %v239_v30 = vsel %vm238_vm3, %v233_v26, -inf }
 0x2a4   :  { %240 = vmax.xlane.f32.xlu0 %v239_v30 }
 0x331   :  { %v241_v31 = vpop.xlane.xlu0 %240 }
 0x332   :  { %v242_v32 = vsub.f32 %v233_v26, %v241_v31 }
 0x334   :  { %v243_v33 = vmul.f32 1.442695, %v242_v32 }
 0x336   :  { %316 = vpow2.f32 %v243_v33 }
 0x340   :  { %v317_v34 = vpop.eup %316 }
 0x341   :  { %v245_v35 = vsel %vm238_vm3, %v317_v34, 0.0 }
 0x342   :  { %246 = vadd.xlane.f32.xlu0 %v245_v35 }
 0x3cf   :  { %v247_v36 = vpop.xlane.xlu0 %246 }
 0x3d0   :  { %318 = vrcp.f32 %v247_v36 }
 0x3da   :  { %v319_v37 = vpop.eup %318 }
 0x3db   :  { %v249_v38 = vmul.f32 %v319_v37, %v317_v34 }
 0x3dd   :  { %250 = vst.msk [vmem:[#allocation5] sm:$0xff] %vm238_vm3, %v249_v38 }
 0x3de   :  { %353 = shalt.err (!%p350_p12)
}
 0x3df   :  { %s354_s28 = scalar_lea.hbm %s470_s7, 128 }
 0x3e0   :  { %p355_p13 = scmp.ne.s32.totalorder %s470_s7, %s354_s28  ;;  %p358_p0 = scmp.lt.u32.totalorder %s354_s28, %s470_s7 }
 0x3e2   :  { %p360_p1 = pnand %p358_p0, %p355_p13 }
 0x3e4   :  { %363 = shalt.err (!%p360_p1)
}
 0x3e5   :  { %260 = dma.vmem_to_hbm [thread:$0]  %s258_s4, 128, %s470_s7, [#allocation4]  }
 0x3e6   :  { %366 = dma.done.wait [#allocation4], 128  }
 0x3e7   :  { %367 = vsyncadd [#allocation4], 4294967168 }
 0x3e8   :  { %264 = vsyncpa [#allocation3], 1 }
 0x3e9   :  { %265 = vsyncpa [#allocation4], 1 }

</bundles_post_ra>
